<compile_context>
chip_gen: v5e
topology: v5e:2x2
jax: 0.10.0
libtpu: 0.0.40
codegen_flags: <defaults>
</compile_context>

<pallas_src>
import functools
import math

import jax
import jax.numpy as jnp
from jax.experimental import pallas as pl
from jax.experimental.pallas import tpu as pltpu


# ---------------------------------------------------------------------------
# Kernels
# ---------------------------------------------------------------------------

def _sdpa_full_kernel(q_ref, k_ref, v_ref, out_ref, attn_ref, *,
                      inv_temperature):
    """Full-Lk softmax: one (h_blk, tile_q, Lk) scores tile per grid step."""
    # Blocks are (1, h_blk, tile_q|Lk, D*); drop the leading batch dim.
    # Fold 1/temperature into the small q tile (weak-typed scalar keeps dtype).
    q = q_ref[0] * inv_temperature     # (h_blk, tile_q, Dk), input dtype
    k = k_ref[0]                       # (h_blk, Lk,     Dk)
    v = v_ref[0]                       # (h_blk, Lk,     Dv)

    # q @ k^T contracting on the head dim directly (no explicit k.T / XLU
    # transpose); native-dtype MXU operands, f32 accumulation.
    scores = jnp.einsum("hqd,hkd->hqk", q, k,
                        preferred_element_type=jnp.float32)

    # Numerically stable softmax over Lk.
    m = jnp.max(scores, axis=-1, keepdims=True)
    e = jnp.exp(scores - m)
    denom = jnp.sum(e, axis=-1, keepdims=True)
    # EUP approximate reciprocal + one Newton step on the (.., 1) column.
    r = pl.reciprocal(denom, approx=True)
    r = r * (2.0 - denom * r)
    p = e * r                          # (h_blk, tile_q, Lk), f32

    # Single big-tile cast; reuse for the attn writeback when dtypes match.
    p_lo = p.astype(v.dtype)
    if attn_ref.dtype == p_lo.dtype:
        attn_ref[0] = p_lo
    else:
        attn_ref[0] = p.astype(attn_ref.dtype)

    out = jnp.einsum("hqk,hkd->hqd", p_lo, v,
                     preferred_element_type=jnp.float32)
    out_ref[0] = out.astype(out_ref.dtype)


def _sdpa_flash_kernel(q_ref, k_ref, v_ref, out_ref, m_sc, l_sc, acc_sc, *,
                       inv_temperature):
    """Online-softmax over Lk chunks (used when attn is not returned)."""
    ki = pl.program_id(3)

    @pl.when(ki == 0)
    def _():
        m_sc[...] = jnp.full(m_sc.shape, -jnp.inf, m_sc.dtype)
        l_sc[...] = jnp.zeros(l_sc.shape, l_sc.dtype)
        acc_sc[...] = jnp.zeros(acc_sc.shape, acc_sc.dtype)

    q = q_ref[0] * inv_temperature     # (h_blk, tile_q, Dk)
    k = k_ref[0]                       # (h_blk, tile_k, Dk)
    v = v_ref[0]                       # (h_blk, tile_k, Dv)

    s = jnp.einsum("hqd,hkd->hqk", q, k, preferred_element_type=jnp.float32)
    m_prev = m_sc[...]
    m_new = jnp.maximum(m_prev, jnp.max(s, axis=-1, keepdims=True))
    alpha = jnp.exp(m_prev - m_new)
    p = jnp.exp(s - m_new)
    l_sc[...] = alpha * l_sc[...] + jnp.sum(p, axis=-1, keepdims=True)
    acc_sc[...] = alpha * acc_sc[...] + jnp.einsum(
        "hqk,hkd->hqd", p.astype(v.dtype), v,
        preferred_element_type=jnp.float32)
    m_sc[...] = m_new

    @pl.when(ki == pl.num_programs(3) - 1)
    def _():
        l = l_sc[...]
        r = pl.reciprocal(l, approx=True)
        r = r * (2.0 - l * r)
        out_ref[0] = (acc_sc[...] * r).astype(out_ref.dtype)


# ---------------------------------------------------------------------------
# Tile / VMEM heuristics
# ---------------------------------------------------------------------------

def _sublane(dtype):
    # Min sublane tile: 8 for 4-byte dtypes, 16 for bf16, 32 for int8/fp8.
    return max(8, 32 // jnp.dtype(dtype).itemsize)


def _largest_aligned_divisor(n, align, cap):
    best = None
    d = align
    while d <= min(n, cap):
        if n % d == 0:
            best = d
        d += align
    return best if best is not None else n


def _pick_tile_q(Lq, dtype):
    """Never collapse below 128 (MXU-native M is 256 on v6e/v7x, 128 on v5e);
    if VMEM is tight, shrink h_blk or use the flash path instead."""
    if Lq <= 512:
        return Lq
    for t in (512, 384, 256, 128):
        if Lq % t == 0:
            return t
    return _largest_aligned_divisor(Lq, _sublane(dtype), 512)


def _pick_tile_k(Lk, dtype):
    if Lk <= 1024:
        return Lk
    for t in (1024, 512, 256):
        if Lk % t == 0:
            return t
    return _largest_aligned_divisor(Lk, _sublane(dtype), 1024)


def _vmem_budget_bytes():
    try:
        cap = pltpu.get_tpu_info().vmem_capacity_bytes
    except Exception:  # not queryable -> assume v7x's per-core 64 MiB
        cap = 64 * 1024 * 1024
    # 3/4 of physical with >=16 MiB headroom: ~96 MiB on v5e/v6e, ~48 MiB v7x.
    return int(min(cap * 3 // 4, cap - 16 * 1024 * 1024))


def _pick_h_block_full(H, tile_q, Lk, Dk, Dv, isz, attn_isz, budget):
    """Largest divisor of H whose per-step set (incl. double-buffering and f32
    softmax temporaries) fits the budget."""
    best = 1
    for h in range(1, H + 1):
        if H % h:
            continue
        blocks = (h * tile_q * Dk + h * Lk * Dk + h * Lk * Dv
                  + h * tile_q * Dv) * isz + h * tile_q * Lk * attn_isz
        interm = 3 * h * tile_q * Lk * 4           # scores / e / p (f32)
        if 2 * blocks + interm <= budget:
            best = h
    return best


def _pick_h_block_flash(H, tile_q, tile_k, Dk, Dv, isz, budget):
    best = 1
    for h in range(1, H + 1):
        if H % h:
            continue
        blocks = (h * tile_q * Dk + h * tile_k * Dk + h * tile_k * Dv
                  + h * tile_q * Dv) * isz
        scratch = h * tile_q * (Dv + 2) * 4        # acc + m + l (f32)
        interm = 2 * h * tile_q * tile_k * 4       # s / p (f32)
        if 2 * blocks + scratch + interm <= budget:
            best = h
    return best


# ---------------------------------------------------------------------------
# Wrapper
# ---------------------------------------------------------------------------

def scaled_dot_product_attention(q, k, v, temperature, *, return_attn=True,
                                 attn_dtype=None, tile_q=None, tile_k=None):
    """q: (B, H, Lq, Dk), k: (B, H, Lk, Dk), v: (B, H, Lk, Dv).

    return_attn=True matches the module's forward (returns (output, attn));
    return_attn=False skips the O(L^2) attn writeback and uses a flash
    (online-softmax) inner loop over Lk chunks.
    """
    B, H, Lq, Dk = q.shape
    _, _, Lk, _ = k.shape
    Dv = v.shape[-1]
    inv_temperature = 1.0 / float(temperature)
    isz = q.dtype.itemsize
    budget = _vmem_budget_bytes()

    if tile_q is None:
        tile_q = _pick_tile_q(Lq, q.dtype)
    assert Lq % tile_q == 0, "tile_q must divide Lq"

    flops = 2 * B * H * Lq * Lk * (Dk + Dv)
    transc = B * H * Lq * Lk
    in_bytes = (q.size * q.dtype.itemsize + k.size * k.dtype.itemsize
                + v.size * v.dtype.itemsize)
    out_bytes = B * H * Lq * Dv * isz

    if return_attn:
        attn_dt = jnp.dtype(attn_dtype) if attn_dtype is not None else q.dtype
        h_blk = _pick_h_block_full(H, tile_q, Lk, Dk, Dv, isz,
                                   attn_dt.itemsize, budget)
        grid = (B, H // h_blk, Lq // tile_q)
        in_specs = [
            pl.BlockSpec((1, h_blk, tile_q, Dk), lambda b, h, i: (b, h, i, 0)),
            pl.BlockSpec((1, h_blk, Lk, Dk),     lambda b, h, i: (b, h, 0, 0)),
            pl.BlockSpec((1, h_blk, Lk, Dv),     lambda b, h, i: (b, h, 0, 0)),
        ]
        out_specs = (
            pl.BlockSpec((1, h_blk, tile_q, Dv), lambda b, h, i: (b, h, i, 0)),
            pl.BlockSpec((1, h_blk, tile_q, Lk), lambda b, h, i: (b, h, i, 0)),
        )
        out_shapes = (jax.ShapeDtypeStruct((B, H, Lq, Dv), q.dtype),
                      jax.ShapeDtypeStruct((B, H, Lq, Lk), attn_dt))
        kernel = functools.partial(_sdpa_full_kernel,
                                   inv_temperature=inv_temperature)
        return pl.pallas_call(
            kernel,
            out_shape=out_shapes,
            grid_spec=pltpu.PrefetchScalarGridSpec(
                num_scalar_prefetch=0, grid=grid,
                in_specs=in_specs, out_specs=out_specs),
            compiler_params=pltpu.CompilerParams(
                # q-tile axis is "arbitrary": K/V blocks are resident across
                # it, so megacore (v7x) shards B/H and keeps per-core K/V
                # reuse instead of doubling K/V HBM traffic.
                dimension_semantics=("parallel", "parallel", "arbitrary"),
                vmem_limit_bytes=budget),
            cost_estimate=pl.CostEstimate(
                flops=flops, transcendentals=transc,
                bytes_accessed=in_bytes + out_bytes
                + B * H * Lq * Lk * attn_dt.itemsize),
        )(q, k, v)

    # ---- flash path (no attn output) --------------------------------------
    if tile_k is None:
        tile_k = _pick_tile_k(Lk, q.dtype)
    assert Lk % tile_k == 0, "tile_k must divide Lk"
    h_blk = _pick_h_block_flash(H, tile_q, tile_k, Dk, Dv, isz, budget)
    grid = (B, H // h_blk, Lq // tile_q, Lk // tile_k)
    in_specs = [
        pl.BlockSpec((1, h_blk, tile_q, Dk), lambda b, h, i, j: (b, h, i, 0)),
        pl.BlockSpec((1, h_blk, tile_k, Dk), lambda b, h, i, j: (b, h, j, 0)),
        pl.BlockSpec((1, h_blk, tile_k, Dv), lambda b, h, i, j: (b, h, j, 0)),
    ]
    out_specs = pl.BlockSpec((1, h_blk, tile_q, Dv),
                             lambda b, h, i, j: (b, h, i, 0))
    out_shapes = jax.ShapeDtypeStruct((B, H, Lq, Dv), q.dtype)
    scratch = [pltpu.VMEM((h_blk, tile_q, 1), jnp.float32),
               pltpu.VMEM((h_blk, tile_q, 1), jnp.float32),
               pltpu.VMEM((h_blk, tile_q, Dv), jnp.float32)]
    kernel = functools.partial(_sdpa_flash_kernel,
                               inv_temperature=inv_temperature)
    return pl.pallas_call(
        kernel,
        out_shape=out_shapes,
        grid_spec=pltpu.PrefetchScalarGridSpec(
            num_scalar_prefetch=0, grid=grid,
            in_specs=in_specs, out_specs=out_specs,
            scratch_shapes=scratch),
        compiler_params=pltpu.CompilerParams(
            dimension_semantics=("parallel", "parallel", "parallel",
                                 "arbitrary"),
            vmem_limit_bytes=budget),
        cost_estimate=pl.CostEstimate(
            flops=flops, transcendentals=transc,
            bytes_accessed=in_bytes + out_bytes),
    )(q, k, v)


# ---------------------------------------------------------------------------
# Reference + self-test
# ---------------------------------------------------------------------------

def _reference(q, k, v, temperature):
    scores = jnp.einsum("bhqd,bhkd->bhqk", q / temperature, k)
    attn = jax.nn.softmax(scores, axis=-1)
    out = jnp.einsum("bhqk,bhkd->bhqd", attn, v)
    return out, attn


if __name__ == "__main__":
    # Small shapes consistent with the module: (B, H, L, D)
    B, H, L, D = 2, 4, 8, 32
    temperature = math.sqrt(D)

    keys = jax.random.split(jax.random.PRNGKey(0), 6)
    q = jax.random.normal(keys[0], (B, H, L, D), dtype=jnp.float32)
    k = jax.random.normal(keys[1], (B, H, L, D), dtype=jnp.float32)
    v = jax.random.normal(keys[2], (B, H, L, D), dtype=jnp.float32)

    out, attn = scaled_dot_product_attention(q, k, v, temperature)
    jax.block_until_ready((out, attn))
    ref_out, ref_attn = _reference(q, k, v, temperature)
    # Tolerance covers the EUP approx-reciprocal (+ Newton step).
    assert jnp.allclose(out, ref_out, atol=1e-4, rtol=1e-4)
    assert jnp.allclose(attn, ref_attn, atol=1e-4, rtol=1e-4)

    # attn-free fast path (flash inner loop; single Lk chunk at this size).
    out_only = scaled_dot_product_attention(q, k, v, temperature,
                                            return_attn=False)
    jax.block_until_ready(out_only)
    assert jnp.allclose(out_only, ref_out, atol=1e-4, rtol=1e-4)

    # Moderate shape exercising multiple q tiles and multi-chunk flash.
    B2, H2, L2, D2 = 1, 2, 256, 64
    t2 = math.sqrt(D2)
    q2 = jax.random.normal(keys[3], (B2, H2, L2, D2), dtype=jnp.float32)
    k2 = jax.random.normal(keys[4], (B2, H2, L2, D2), dtype=jnp.float32)
    v2 = jax.random.normal(keys[5], (B2, H2, L2, D2), dtype=jnp.float32)
    out2, attn2 = scaled_dot_product_attention(q2, k2, v2, t2, tile_q=128)
    out2f = scaled_dot_product_attention(q2, k2, v2, t2, return_attn=False,
                                         tile_q=128, tile_k=128)
    jax.block_until_ready((out2, attn2, out2f))
    r_out2, r_attn2 = _reference(q2, k2, v2, t2)
    assert jnp.allclose(out2, r_out2, atol=1e-4, rtol=1e-4)
    assert jnp.allclose(attn2, r_attn2, atol=1e-4, rtol=1e-4)
    assert jnp.allclose(out2f, r_out2, atol=1e-4, rtol=1e-4)

    print("KERNEL_OK")
</pallas_src>

<mosaic_0001>
module attributes {stable_mosaic.version = 11 : i64} {
  func.func @_sdpa_full_kernel(%arg0: i32, %arg1: i32, %arg2: i32, %arg3: memref<1x4x8x32xf32, #tpu.memory_space<vmem>>, %arg4: memref<1x4x8x32xf32, #tpu.memory_space<vmem>>, %arg5: memref<1x4x8x32xf32, #tpu.memory_space<vmem>>, %arg6: memref<1x4x8x32xf32, #tpu.memory_space<vmem>>, %arg7: memref<1x4x8x8xf32, #tpu.memory_space<vmem>>) attributes {dimension_semantics = [#tpu.dimension_semantics<parallel>, #tpu.dimension_semantics<parallel>, #tpu.dimension_semantics<arbitrary>], iteration_bounds = array<i64: 2, 1, 1>, scalar_prefetch = 0 : i64, scratch_operands = 0 : i64, tpu.core_type = #tpu.core_type<tc>, window_params = [{transform_indices = @transform_0, window_bounds = array<i64: 1, 4, 8, 32>}, {transform_indices = @transform_1, window_bounds = array<i64: 1, 4, 8, 32>}, {transform_indices = @transform_2, window_bounds = array<i64: 1, 4, 8, 32>}, {transform_indices = @transform_3, window_bounds = array<i64: 1, 4, 8, 32>}, {transform_indices = @transform_4, window_bounds = array<i64: 1, 4, 8, 8>}]} {
    %c0 = arith.constant 0 : index
    %c0_0 = arith.constant 0 : index
    %c0_1 = arith.constant 0 : index
    %c0_2 = arith.constant 0 : index
    %0 = vector.load %arg3[%c0, %c0_0, %c0_1, %c0_2] : memref<1x4x8x32xf32, #tpu.memory_space<vmem>>, vector<1x4x8x32xf32>
    %1 = vector.shape_cast %0 : vector<1x4x8x32xf32> to vector<4x8x32xf32>
    %cst = arith.constant 0.176776692 : f32
    %2 = vector.broadcast %cst : f32 to vector<4x8x32xf32>
    %3 = arith.mulf %1, %2 : vector<4x8x32xf32>
    %c0_3 = arith.constant 0 : index
    %c0_4 = arith.constant 0 : index
    %c0_5 = arith.constant 0 : index
    %c0_6 = arith.constant 0 : index
    %4 = vector.load %arg4[%c0_3, %c0_4, %c0_5, %c0_6] : memref<1x4x8x32xf32, #tpu.memory_space<vmem>>, vector<1x4x8x32xf32>
    %5 = vector.shape_cast %4 : vector<1x4x8x32xf32> to vector<4x8x32xf32>
    %c0_7 = arith.constant 0 : index
    %c0_8 = arith.constant 0 : index
    %c0_9 = arith.constant 0 : index
    %c0_10 = arith.constant 0 : index
    %6 = vector.load %arg5[%c0_7, %c0_8, %c0_9, %c0_10] : memref<1x4x8x32xf32, #tpu.memory_space<vmem>>, vector<1x4x8x32xf32>
    %7 = vector.shape_cast %6 : vector<1x4x8x32xf32> to vector<4x8x32xf32>
    "tpu.trace_start"() <{level = 10 : i32, message = "hqd,hkd->hqk"}> : () -> ()
    %cst_11 = arith.constant dense<0.000000e+00> : vector<4x8x8xf32>
    %8 = tpu.matmul %3, %5, %cst_11 {dimension_numbers = #tpu.dot_dimension_numbers<[2], [2], [1], [1], [0, 0, 0, 1, 1, 1], [0], [0]>} : vector<4x8x32xf32>, vector<4x8x32xf32>, vector<4x8x8xf32> -> vector<4x8x8xf32>
    "tpu.trace_stop"() : () -> ()
    %cst_12 = arith.constant dense<0xFF800000> : vector<4x8xf32>
    %9 = vector.multi_reduction <maximumf>, %8, %cst_12 [2] : vector<4x8x8xf32> to vector<4x8xf32>
    %10 = vector.shape_cast %9 : vector<4x8xf32> to vector<4x8x1xf32>
    %11 = vector.broadcast %10 : vector<4x8x1xf32> to vector<4x8x8xf32>
    %12 = arith.subf %8, %11 : vector<4x8x8xf32>
    %13 = math.exp %12 : vector<4x8x8xf32>
    %cst_13 = arith.constant dense<0.000000e+00> : vector<4x8xf32>
    %14 = vector.multi_reduction <add>, %13, %cst_13 [2] : vector<4x8x8xf32> to vector<4x8xf32>
    %15 = vector.shape_cast %14 : vector<4x8xf32> to vector<4x8x1xf32>
    %16 = tpu.reciprocal %15 {approx = true} : vector<4x8x1xf32> -> vector<4x8x1xf32>
    %17 = arith.mulf %15, %16 : vector<4x8x1xf32>
    %cst_14 = arith.constant 2.000000e+00 : f32
    %18 = vector.broadcast %cst_14 : f32 to vector<4x8x1xf32>
    %19 = arith.subf %18, %17 : vector<4x8x1xf32>
    %20 = arith.mulf %16, %19 : vector<4x8x1xf32>
    %21 = vector.broadcast %20 : vector<4x8x1xf32> to vector<4x8x8xf32>
    %22 = arith.mulf %13, %21 : vector<4x8x8xf32>
    %c0_15 = arith.constant 0 : index
    %c0_16 = arith.constant 0 : index
    %c0_17 = arith.constant 0 : index
    %c0_18 = arith.constant 0 : index
    %23 = vector.load %arg7[%c0_15, %c0_16, %c0_17, %c0_18] : memref<1x4x8x8xf32, #tpu.memory_space<vmem>>, vector<1x4x8x8xf32>
    %24 = vector.shape_cast %23 : vector<1x4x8x8xf32> to vector<4x8x8xf32>
    %25 = vector.shape_cast %22 : vector<4x8x8xf32> to vector<1x4x8x8xf32>
    tpu.vector_store %arg7[%c0_15, %c0_16, %c0_17, %c0_18], %25 {strides = array<i32>} : memref<1x4x8x8xf32, #tpu.memory_space<vmem>>, vector<1x4x8x8xf32>,
    "tpu.trace_start"() <{level = 10 : i32, message = "hqk,hkd->hqd"}> : () -> ()
    %cst_19 = arith.constant dense<0.000000e+00> : vector<4x8x32xf32>
    %26 = tpu.matmul %22, %7, %cst_19 {dimension_numbers = #tpu.dot_dimension_numbers<[2], [1], [1], [2], [0, 0, 0, 1, 1, 2], [0], [0]>} : vector<4x8x8xf32>, vector<4x8x32xf32>, vector<4x8x32xf32> -> vector<4x8x32xf32>
    "tpu.trace_stop"() : () -> ()
    %c0_20 = arith.constant 0 : index
    %c0_21 = arith.constant 0 : index
    %c0_22 = arith.constant 0 : index
    %c0_23 = arith.constant 0 : index
    %27 = vector.load %arg6[%c0_20, %c0_21, %c0_22, %c0_23] : memref<1x4x8x32xf32, #tpu.memory_space<vmem>>, vector<1x4x8x32xf32>
    %28 = vector.shape_cast %27 : vector<1x4x8x32xf32> to vector<4x8x32xf32>
    %29 = vector.shape_cast %26 : vector<4x8x32xf32> to vector<1x4x8x32xf32>
    tpu.vector_store %arg6[%c0_20, %c0_21, %c0_22, %c0_23], %29 {strides = array<i32>} : memref<1x4x8x32xf32, #tpu.memory_space<vmem>>, vector<1x4x8x32xf32>,
    return
  }
  func.func @transform_0(%arg0: i32, %arg1: i32, %arg2: i32) -> (i32, i32, i32, i32) {
    %c0_i32 = arith.constant 0 : i32
    %c0_i32_0 = arith.constant 0 : i32
    return %arg0, %arg1, %arg2, %c0_i32 : i32, i32, i32, i32
  }
  func.func @transform_1(%arg0: i32, %arg1: i32, %arg2: i32) -> (i32, i32, i32, i32) {
    %c0_i32 = arith.constant 0 : i32
    %c0_i32_0 = arith.constant 0 : i32
    %c0_i32_1 = arith.constant 0 : i32
    return %arg0, %arg1, %c0_i32, %c0_i32_0 : i32, i32, i32, i32
  }
  func.func @transform_2(%arg0: i32, %arg1: i32, %arg2: i32) -> (i32, i32, i32, i32) {
    %c0_i32 = arith.constant 0 : i32
    %c0_i32_0 = arith.constant 0 : i32
    %c0_i32_1 = arith.constant 0 : i32
    return %arg0, %arg1, %c0_i32, %c0_i32_0 : i32, i32, i32, i32
  }
  func.func @transform_3(%arg0: i32, %arg1: i32, %arg2: i32) -> (i32, i32, i32, i32) {
    %c0_i32 = arith.constant 0 : i32
    %c0_i32_0 = arith.constant 0 : i32
    return %arg0, %arg1, %arg2, %c0_i32 : i32, i32, i32, i32
  }
  func.func @transform_4(%arg0: i32, %arg1: i32, %arg2: i32) -> (i32, i32, i32, i32) {
    %c0_i32 = arith.constant 0 : i32
    %c0_i32_0 = arith.constant 0 : i32
    return %arg0, %arg1, %arg2, %c0_i32 : i32, i32, i32, i32
  }
}

</mosaic_0001>

<bundles_post_ra>
// kernel: tpu_custom_call.1
= control target key start
LH: loop header
LB: loop body
LE: loop exit
PB: predicated region body
PF: predicated region fallthrough
CT: control target
= control target key end

     0   :  { %s1453_s0 = inlined_call_operand.hbm [shape: f32[2,4,8,32], index: 0, kind: input, shape index: {}]   ;;  %s1454_s1 = inlined_call_operand.hbm [shape: f32[2,4,8,32], index: 1, kind: input, shape index: {}]   ;;  %s1455_s2 = inlined_call_operand.hbm [shape: f32[2,4,8,32], index: 2, kind: input, shape index: {}]   ;;  %s1456_s3 = inlined_call_operand.hbm [shape: f32[2,4,8,32], index: 3, kind: output, shape index: {0}]   ;;  %s1457_s4 = inlined_call_operand.hbm [shape: f32[2,4,8,8], index: 4, kind: output, shape index: {1}]  }
   0x1   :  { %1464 = sst [smem:[#allocation21_spill]] %s1454_s1 }
   0x2   :  { %10 = vsyncpa [#allocation3], 0 }
   0x3   :  { %12 = vsyncpa [#allocation3 + $0x1], 0 }
   0x4   :  { %13 = vsyncpa [#allocation6], 0 }
   0x5   :  { %15 = vsyncpa [#allocation6 + $0x1], 0 }
   0x6   :  { %16 = vsyncpa [#allocation4], 0 }
   0x7   :  { %18 = vsyncpa [#allocation4 + $0x1], 0 }
   0x8   :  { %19 = vsyncpa [#allocation10], 0 }
   0x9   :  { %21 = vsyncpa [#allocation10 + $0x1], 0  ;;  %s1237_s15 = smov 0   ;;  %s1239_s16 = smov 0  }
   0xa   :  { %s1241_s17 = smov 0   ;;  %s1243_s18 = smov 0  }
   0xb   :  { %s1245_s19 = smov 0   ;;  %s1247_s20 = smov 0  }
   0xc LB: > { %1465 = sst [smem:[#allocation15_spill]] %s1194_s17  ;;  %s1268_s21 = sadd.s32 4294967295, %s1206_s20   ;;  %s1206_s20 = sphi %s1247_s20, %s27_s20   ;;  %s1202_s19 = sphi %s1245_s19, %s1483_s19   ;;  %s1198_s18 = sphi %s1243_s18, %s1482_s18   ;;  %s1194_s17 = sphi %s1241_s17, %s1481_s17   ;;  %s1190_s16 = sphi %s1239_s16, %s1485_s16   ;;  %s1186_s15 = sphi %s1237_s15, %s1484_s15  }
   0xd   : > { %1466 = sst [smem:[#allocation16_spill]] %s1202_s19  ;;  %s858_s22 = sadd.s32 4294967294, %s1206_s20  }
   0xe   : > { %1467 = sst [smem:[#allocation17_spill]] %s1206_s20  ;;  %s46_s23 = sadd.s32 1, %s1202_s19 }
   0xf   : > { %s57_s24 = sadd.s32 1, %s1194_s17  ;;  %p48_p0 = scmp.ge.s32.totalorder %s46_s23, 2 }
  0x10   : > { %p64_p1 = scmp.ne.s32.totalorder %s1194_s17, %s1190_s16  ;;  %p65_p2 = scmp.eq.s32.totalorder %s1206_s20, 0 }
  0x11   : > { %p70_p3 = scmp.ne.s32.totalorder %s1190_s16, %s1186_s15  ;;  %s1487_s23 = smov (%p48_p0, %s46_s23), 0 }
  0x12   : > { %1468 = sst [smem:[#allocation18_spill]] %s1487_s23  ;;  %p1280_p4 = por %p65_p2, %p64_p1 }
  0x13   : > { %p71_p5 = scmp.eq.s32.totalorder %s1268_s21, 0  ;;  %s50_s26 = ssub.s32 %s1202_s19, %s1487_s23 }
  0x14   : > { %p154_p6 = scmp.eq.s32.totalorder %s1268_s21, 1  ;;  %p55_p7 = scmp.eq.s32.totalorder %s50_s26, 0 }
  0x15   : > { %p1288_p8 = por %p71_p5, %p70_p3  ;;  %p160_p10 = scmp.eq.s32.totalorder %s858_s22, 1 }
  0x16   : > { %p1292_p9 = por %p154_p6, %p64_p1  ;;  %p860_p12 = scmp.ge.s32.totalorder %s1206_s20, 2 }
  0x17   : > { %s1297_s29 = scalar_select %p55_p7, %s1194_s17, %s57_s24  }
  0x18   : > { %p1299_p11 = por %p160_p10, %p70_p3  ;;  %p928_p13 = scmp.lt.s32.totalorder %s1206_s20, 2 }
  0x19   : > { %1472 = sst [smem:[#allocation19_spill]] %s1297_s29  ;;  %s210_s5 = sand.u32 1, %s1194_s17  }
  0x1a   : > { %s1473_s30 = scalar_select %p1299_p11, 1, 0 }
  0x1b   : > { %s1306_s6 = sshll.u32 %s210_s5, 5  ;;  %s896_s7 = sshll.u32 %s1202_s19, 5 }
  0x1c   : > { %1474 = sst [smem:[#allocation20_spill]] %s1473_s30  ;;  %p1311_p0 = pnand %p928_p13, %p1280_p4 }
  0x1d   : > { %s235_s9 = sand.u32 1, %s1206_s20   ;;  %s1476_s1 = sld [smem:[#allocation21_spill]] }
  0x1e   : > { %s239_s14 = scalar_lea.vmem [#allocation5], %s1306_s6  ;;  %s236_s24 = scalar_lea.sflag [#allocation6], %s235_s9 }
  0x1f   : > { %s249_s22 = sshll.u32 %s239_s14, 4  ;;  %s1208_s26 = smov 128   ;;  %s250_s22 = int_to_ptr.vmem [resolvable:$true] %s249_s22 }
  0x20   : > { %s1209_s25 = smov 8   ;;  %p870_p1 = scmp.ge.s32.totalorder %s1206_s20, 1 }
  0x21   : > { %p281_p2 = scmp.lt.s32.totalorder %s1206_s20, 3  ;;  %s211_s9 = scalar_lea.sflag [#allocation3], %s210_s5 }
  0x22   : > { %s270_s29 = scalar_lea.hbm %s1455_s2, %s896_s7  ;;  %s263_s20 = scalar_lea.vmem [#allocation7], %s1306_s6 }
  0x23   : > { %s246_s12 = scalar_lea.hbm %s1476_s1, %s896_s7  ;;  %p1324_p3 = pnand %p870_p1, %p281_p2 }
  0x24   : > { %s247_s13 = sshll.u32 %s246_s12, 4  ;;  %s222_s12 = scalar_lea.hbm %s1453_s0, %s896_s7  ;;  %s248_s13 = int_to_ptr.hbm [resolvable:$true] %s247_s13 }
  0x25   : > { %917 = dma.hbm_to_vmem [thread:$0]  (!%p1311_p0), %s248_s13, 512, %s250_s22, %s236_s24, %s1208_s26, %s1208_s26, %s1209_s25  }
  0x26   : > { %s223_s14 = sshll.u32 %s222_s12, 4  ;;  %s214_s1 = scalar_lea.vmem [#allocation2], %s1306_s6  ;;  %s224_s14 = int_to_ptr.hbm [resolvable:$true] %s223_s14 }
  0x27   : > { %s225_s19 = sshll.u32 %s214_s1, 4  ;;  %s271_s17 = sshll.u32 %s270_s29, 4  ;;  %s226_s19 = int_to_ptr.vmem [resolvable:$true] %s225_s19  ;;  %s272_s17 = int_to_ptr.hbm [resolvable:$true] %s271_s17 }
  0x28   : > { %914 = dma.hbm_to_vmem [thread:$0]  (!%p1311_p0), %s224_s14, 512, %s226_s19, %s211_s9, %s1208_s26, %s1208_s26, %s1209_s25  }
  0x29   : > { %s273_s30 = sshll.u32 %s263_s20, 4  ;;  %285 = sbr.rel (%p1324_p3) target bundleno = 589 (0x24d), region = 32  ;;  %s274_s30 = int_to_ptr.vmem [resolvable:$true] %s273_s30 }
  0x2a   : > { %920 = dma.hbm_to_vmem [thread:$0]  (!%p1311_p0), %s272_s17, 512, %s274_s30, %s236_s24, %s1208_s26, %s1208_s26, %s1209_s25  }
  0x2b   : > { %s1343_s1 = sand.u32 (!%p1324_p3), 1, %s1190_s16  }
  0x2c   : > { %s1346_s19 = sshll.u32 (!%p1324_p3), %s1343_s1, 5  ;;  %s288_s5 = scalar_lea.sflag (!%p1324_p3), [#allocation3], %s1343_s1 }
  0x2d   : > { %s291_s29 = scalar_lea.vmem (!%p1324_p3), [#allocation2], %s1346_s19 }
  0x2e   : > { %1169 = dma.done.wait (%p1288_p8), %s288_s5, 512  }
  0x2f   : > { %1171 = vsyncadd (%p1288_p8), %s288_s5, 4294966784  ;;  %s297_s17 = sand.u32 1, %s1268_s21   ;;  %s301_s23 = scalar_lea.vmem [#allocation5], %s1346_s19 }
  0x30   : > { %s298_s20 = scalar_lea.sflag [#allocation6], %s297_s17 }
  0x31   : > { %1173 = dma.done.wait (%p1288_p8), %s298_s20, 1024  }
  0x32   : > { %1175 = vsyncadd (%p1288_p8), %s298_s20, 4294966272  ;;  %vm373_vm0 = vcmask 261120   ;;  %v365_v0 = vld [vmem:[%s301_s23] sm:$0xff]  ;;  %v367_v1 = vld [vmem:[%s301_s23 + $0x10] sm:$0xff]  ;;  %vm478_vm1 = vcmask 64512   ;;  %s311_s21 = scalar_lea.vmem [#allocation7], %s1346_s19 }
  0x33   : > { %v357_v2 = vld [vmem:[%s291_s29] sm:$0xff]  ;;  %876 = vmatpush.xpose.msk.msra.mxu0 %vm373_vm0, %v365_v0  ;;  %880 = vmatpush.xpose.msk.msra.mxu2 %vm373_vm0, %v367_v1  ;;  %v359_v4 = vld [vmem:[%s291_s29 + $0x10] sm:$0xff]  ;;  %v366_v5 = vld [vmem:[%s301_s23 + $0x8] sm:$0xff]  ;;  %s351_s27 = scalar_lea.vmem [#allocation9], %s1346_s19  ;;  %s899_s30 = sshll.u32 %s1198_s18, 5 }
  0x34   : > { %v361_v3 = vmul.f32 0.17677669, %v357_v2  ;;  %v368_v6 = vld [vmem:[%s301_s23 + $0x18] sm:$0xff]  ;;  %v363_v7 = vmul.f32 0.17677669, %v359_v4  ;;  %878 = vmatpush.xpose.msk.msra.mxu1 %vm373_vm0, %v366_v5  ;;  %v358_v8 = vld [vmem:[%s291_s29 + $0x8] sm:$0xff]  ;;  %s675_s24 = scalar_lea.hbm %s1457_s4, %s899_s30 }
  0x35   : > { %882 = vmatpush.xpose.msk.msra.mxu3 %vm373_vm0, %v368_v6  ;;  %v360_v9 = vld [vmem:[%s291_s29 + $0x18] sm:$0xff]  ;;  %v362_v10 = vmul.f32 0.17677669, %v358_v8  ;;  %v369_v40 = vld [vmem:[%s311_s21] sm:$0xff]  ;;  %v371_v41 = vld [vmem:[%s311_s21 + $0x10] sm:$0xff]  ;;  %s676_s6 = sshll.u32 %s351_s27, 4  ;;  %s677_s6 = int_to_ptr.vmem [resolvable:$true] %s676_s6 }
  0x36   : > { %v364_v11 = vmul.f32 0.17677669, %v360_v9  ;;  %877 = vmatmul.msk.f32.vlgmr.msra.gmra.mxu0 %vm373_vm0, %v361_v3  ;;  %881 = vmatmul.msk.f32.vlgmr.msra.gmra.mxu2 %vm373_vm0, %v363_v7  ;;  %v370_v42 = vld [vmem:[%s311_s21 + $0x8] sm:$0xff]  ;;  %v372_v43 = vld [vmem:[%s311_s21 + $0x18] sm:$0xff]  ;;  %s678_s26 = sshll.u32 %s675_s24, 4  ;;  %s641_s25 = scalar_lea.sflag [#allocation10], %s1343_s1  ;;  %s679_s26 = int_to_ptr.hbm [resolvable:$true] %s678_s26 }
  0x37   : > { %879 = vmatmul.msk.f32.vlgmr.msra.gmra.mxu1 %vm373_vm0, %v362_v10  ;;  %557 = vmatpush.msrb.mxu0 %v369_v40  ;;  %s1102_s10 = sshra.s32 %s679_s26, 4  ;;  %s1108_s9 = scalar_lea.hbm %s1457_s4, 64  ;;  %s1103_s10 = int_to_ptr.hbm [resolvable:$true] %s1102_s10 }
  0x38   : > { %883 = vmatmul.msk.f32.vlgmr.msra.gmra.mxu3 %vm373_vm0, %v364_v11  ;;  %603 = vmatpush.msrb.mxu2 %v371_v41  ;;  %s1104_s11 = scalar_lea.hbm %s1103_s10, 32  ;;  %p1109_p7 = scmp.lt.s32.totalorder %s1103_s10, %s1457_s4 }
  0x39   : > { %580 = vmatpush.msrb.mxu1 %v370_v42  ;;  %626 = vmatpush.msrb.mxu3 %v372_v43  ;;  %p1105_p4 = scmp.ne.s32.totalorder %s1103_s10, %s1104_s11  ;;  %p1110_p8 = scmp.lt.s32.totalorder %s1108_s9, %s1104_s11 }
  0x3b   : > { %p1106_p5 = pnand %p1105_p4, %p1292_p9  ;;  %p1111_p10 = por %p1110_p8, %p1109_p7 }
  0x3d   : > { %p1107_p6 = pneg %p1106_p5 }
  0x3f   : > { %p1112_p13 = pnand %p1111_p10, %p1107_p6 }
  0xb3   : > { %v397_v12 = vpop.f32.mrf.mxu0 }
  0xb4   : > { %v479_v13 = vsel %vm478_vm1, %v397_v12, -inf  ;;  %v423_v14 = vpop.f32.mrf.mxu1 }
  0xb5   : > { %480 = vmax.xlane.f32.xlu1 %v479_v13  ;;  %v482_v17 = vsel %vm478_vm1, %v423_v14, -inf }
  0xb9   : > { %v449_v15 = vpop.f32.mrf.mxu2 }
  0xba   : > { %v485_v16 = vsel %vm478_vm1, %v449_v15, -inf }
  0xbb   : > { %486 = vmax.xlane.f32.xlu0 %v485_v16  ;;  %v475_v18 = vpop.f32.mrf.mxu3 }
  0xbc   : > { %v488_v19 = vsel %vm478_vm1, %v475_v18, -inf }
  0xbd   : > { %483 = vmax.xlane.f32.xlu1 %v482_v17 }
  0xc3   : > { %489 = vmax.xlane.f32.xlu0 %v488_v19 }
 0x128   : > { %v481_v20 = vpop.xlane.xlu1 %480 }
 0x129   : > { %v491_v21 = vsub.f32 %v397_v12, %v481_v20 }
 0x12b   : > { %v495_v22 = vmul.f32 1.442695, %v491_v21 }
 0x12d   : > { %982 = vpow2.f32 %v495_v22 }
 0x12e   : > { %v487_v23 = vpop.xlane.xlu0 %486 }
 0x12f   : > { %v493_v24 = vsub.f32 %v449_v15, %v487_v23 }
 0x130   : > { %v484_v25 = vpop.xlane.xlu1 %483 }
 0x131   : > { %v499_v26 = vmul.f32 1.442695, %v493_v24  ;;  %v492_v27 = vsub.f32 %v423_v14, %v484_v25 }
 0x133   : > { %v983_v28 = vpop.eup %982  ;;  %984 = vpow2.f32 %v499_v26  ;;  %v497_v29 = vmul.f32 1.442695, %v492_v27 }
 0x134   : > { %v503_v30 = vsel %vm478_vm1, %v983_v28, 0.0 }
 0x135   : > { %986 = vpow2.f32 %v497_v29  ;;  %504 = vadd.xlane.f32.xlu0 %v503_v30 }
 0x136   : > { %v490_v31 = vpop.xlane.xlu0 %489 }
 0x137   : > { %v494_v32 = vsub.f32 %v475_v18, %v490_v31 }
 0x139   : > { %v985_v33 = vpop.eup %984  ;;  %v501_v34 = vmul.f32 1.442695, %v494_v32 }
 0x13a   : > { %v509_v35 = vsel %vm478_vm1, %v985_v33, 0.0 }
 0x13b   : > { %v987_v36 = vpop.eup %986  ;;  %988 = vpow2.f32 %v501_v34  ;;  %510 = vadd.xlane.f32.xlu2 %v509_v35 }
 0x13c   : > { %v506_v37 = vsel %vm478_vm1, %v987_v36, 0.0 }
 0x13d   : > { %507 = vadd.xlane.f32.xlu1 %v506_v37 }
 0x141   : > { %v989_v38 = vpop.eup %988 }
 0x142   : > { %v512_v39 = vsel %vm478_vm1, %v989_v38, 0.0 }
 0x143   : > { %513 = vadd.xlane.f32.xlu2 %v512_v39 }
 0x1a8   : > { %v505_v44 = vpop.xlane.xlu0 %504 }
 0x1a9   : > { %990 = vrcp.f32 %v505_v44 }
 0x1ae   : > { %v511_v45 = vpop.xlane.xlu2 %510 }
 0x1af   : > { %v991_v46 = vpop.eup %990  ;;  %992 = vrcp.f32 %v511_v45 }
 0x1b0   : > { %v519_v47 = vmul.f32 %v991_v46, %v505_v44  ;;  %v508_v48 = vpop.xlane.xlu1 %507 }
 0x1b1   : > { %994 = vrcp.f32 %v508_v48 }
 0x1b2   : > { %v523_v49 = vsub.f32 2.0, %v519_v47 }
 0x1b4   : > { %v527_v50 = vmul.f32 %v991_v46, %v523_v49 }
 0x1b5   : > { %v993_v51 = vpop.eup %992 }
 0x1b6   : > { %v531_v52 = vmul.f32 %v983_v28, %v527_v50  ;;  %v521_v53 = vmul.f32 %v993_v51, %v511_v45  ;;  %v514_v54 = vpop.xlane.xlu2 %513 }
 0x1b7   : > { %v995_v55 = vpop.eup %994  ;;  %996 = vrcp.f32 %v514_v54 }
 0x1b8   : > { %535 = vst.msk [vmem:[%s351_s27] sm:$0xff] %vm478_vm1, %v531_v52  ;;  %v525_v56 = vsub.f32 2.0, %v521_v53  ;;  %v520_v57 = vmul.f32 %v995_v55, %v508_v48  ;;  %884 = vmatmul.msk.f32.vlgmr.msrb.gmra.mxu0 %vm478_vm1, %v531_v52 }
 0x1ba   : > { %v529_v58 = vmul.f32 %v993_v51, %v525_v56  ;;  %v524_v59 = vsub.f32 2.0, %v520_v57 }
 0x1bc   : > { %v533_v60 = vmul.f32 %v985_v33, %v529_v58  ;;  %v528_v61 = vmul.f32 %v995_v55, %v524_v59 }
 0x1bd   : > { %v997_v62 = vpop.eup %996 }
 0x1be   : > { %537 = vst.msk [vmem:[%s351_s27 + $0x10] sm:$0xff] %vm478_vm1, %v533_v60  ;;  %v532_v63 = vmul.f32 %v987_v36, %v528_v61  ;;  %v522_v0 = vmul.f32 %v997_v62, %v514_v54  ;;  %886 = vmatmul.msk.f32.vlgmr.msrb.gmra.mxu2 %vm478_vm1, %v533_v60 }
 0x1c0   : > { %536 = vst.msk [vmem:[%s351_s27 + $0x8] sm:$0xff] %vm478_vm1, %v532_v63  ;;  %v526_v1 = vsub.f32 2.0, %v522_v0  ;;  %885 = vmatmul.msk.f32.vlgmr.msrb.gmra.mxu1 %vm478_vm1, %v532_v63 }
 0x1c2   : > { %v530_v2 = vmul.f32 %v997_v62, %v526_v1 }
 0x1c4   : > { %v534_v3 = vmul.f32 %v989_v38, %v530_v2 }
 0x1c6   : > { %538 = vst.msk [vmem:[%s351_s27 + $0x18] sm:$0xff] %vm478_vm1, %v534_v3  ;;  %887 = vmatmul.msk.f32.vlgmr.msrb.gmra.mxu3 %vm478_vm1, %v534_v3 }
 0x1c7   : > { %1115 = shalt.err (!%p1112_p13)
}
 0x1c8   : > { %s1210_s5 = smov 128   ;;  %s1211_s29 = smov 8  }
 0x1c9   : > { %908 = dma.vmem_to_hbm [thread:$0]  (%p1292_p9), %s677_s6, 512, %s679_s26, %s641_s25, %s1210_s5, %s1210_s5, %s1211_s29  }
 0x1ca   : > { %s344_s17 = scalar_lea.vmem [#allocation8], %s1346_s19  ;;  %s655_s21 = scalar_lea.hbm %s1456_s3, %s899_s30 }
 0x1cb   : > { %s656_s27 = sshll.u32 %s344_s17, 4  ;;  %s658_s7 = sshll.u32 %s655_s21, 4  ;;  %s657_s27 = int_to_ptr.vmem [resolvable:$true] %s656_s27  ;;  %s659_s7 = int_to_ptr.hbm [resolvable:$true] %s658_s7 }
 0x1cc   : > { %s636_s19 = scalar_lea.sflag [#allocation4], %s1343_s1  ;;  %s1130_s6 = sshra.s32 %s659_s7, 4  ;;  %s1131_s6 = int_to_ptr.hbm [resolvable:$true] %s1130_s6 }
 0x1cd   : > { %s1132_s8 = scalar_lea.hbm %s1131_s6, 32  ;;  %s1136_s26 = scalar_lea.hbm %s1456_s3, 64 }
 0x1ce   : > { %p1133_p0 = scmp.ne.s32.totalorder %s1131_s6, %s1132_s8  ;;  %p1137_p3 = scmp.lt.s32.totalorder %s1131_s6, %s1456_s3 }
 0x1cf   : > { %p1138_p4 = scmp.lt.s32.totalorder %s1136_s26, %s1132_s8 }
 0x1d0   : > { %p1134_p1 = pnand %p1133_p0, %p1292_p9 }
 0x1d1   : > { %p1139_p5 = por %p1138_p4, %p1137_p3 }
 0x1d2   : > { %p1135_p2 = pneg %p1134_p1 }
 0x1d4   : > { %p1140_p6 = pnand %p1139_p5, %p1135_p2 }
 0x235   : > { %v559_v4 = vpop.f32.mrf.mxu0 }
 0x236   : > { %631 = vst.msk [vmem:[%s344_s17] sm:$0xff] %vm373_vm0, %v559_v4 }
 0x23d   : > { %v582_v5 = vpop.f32.mrf.mxu1 }
 0x23e   : > { %632 = vst.msk [vmem:[%s344_s17 + $0x8] sm:$0xff] %vm373_vm0, %v582_v5 }
 0x241   : > { %v605_v6 = vpop.f32.mrf.mxu2 }
 0x242   : > { %633 = vst.msk [vmem:[%s344_s17 + $0x10] sm:$0xff] %vm373_vm0, %v605_v6 }
 0x249   : > { %v628_v7 = vpop.f32.mrf.mxu3 }
 0x24a   : > { %634 = vst.msk [vmem:[%s344_s17 + $0x18] sm:$0xff] %vm373_vm0, %v628_v7 }
 0x24b   : > { %1143 = shalt.err (!%p1140_p6)
}
 0x24c   : > { %907 = dma.vmem_to_hbm [thread:$0]  (%p1292_p9), %s657_s27, 512, %s659_s7, %s636_s19, %s1210_s5, %s1210_s5, %s1211_s29  }
 0x24d PF: > { %s1479_s10 = sld [smem:[#allocation17_spill]]  ;;  %s693_s11 = sand.u32 1, %s1186_s15  }
 0x24e   : > { %p922_p7 = pnand %p860_p12, %p1299_p11  ;;  %s694_s12 = scalar_lea.sflag [#allocation4], %s693_s11 }
 0x250   : > { %p923_p8 = pneg %p922_p7 }
 0x252   : > { %1177 = dma.done.wait (%p923_p8), %s694_s12, 512  }
 0x253   : > { %1179 = vsyncadd (%p923_p8), %s694_s12, 4294966784  ;;  %s704_s14 = scalar_lea.sflag [#allocation10], %s693_s11 }
 0x254   : > { %1181 = dma.done.wait (%p923_p8), %s704_s14, 512  }
 0x255   : > { %1183 = vsyncadd (%p923_p8), %s704_s14, 4294966784  ;;  %s27_s20 = sadd.s32 1, %s1479_s10   ;;  %s1480_s28 = sld [smem:[#allocation15_spill]] }
 0x256   : > { %p24_p10 = scmp.ge.s32.totalorder %s27_s20, 4   ;;  %s1481_s17 = sld [smem:[#allocation19_spill]] }
 0x257   : > { %s1482_s18 = sld [smem:[#allocation16_spill]]  ;;  %s1484_s15 = smov %s1190_s16 }
 0x258   : > { %s1483_s19 = sld [smem:[#allocation18_spill]]  ;;  %26 = sbr.rel (!%p24_p10) target bundleno = 12 (0xc), region = 118 }
 0x25b   : > { %s1485_s16 = smov %s1480_s28 }
 0x25d   :  { %710 = vsyncpa [#allocation3], 1 }
 0x25e   :  { %712 = vsyncpa [#allocation3 + $0x1], 1 }
 0x25f   :  { %713 = vsyncpa [#allocation6], 1 }
 0x260   :  { %715 = vsyncpa [#allocation6 + $0x1], 1 }
 0x261   :  { %716 = vsyncpa [#allocation4], 1 }
 0x262   :  { %718 = vsyncpa [#allocation4 + $0x1], 1 }
 0x263   :  { %719 = vsyncpa [#allocation10], 1 }
 0x264   :  { %721 = vsyncpa [#allocation10 + $0x1], 1 }

</bundles_post_ra>
